<compile_context>
chip_gen: v6e
topology: v6e:2x2x1
jax: 0.10.0
libtpu: 0.0.40
codegen_flags: <defaults>
</compile_context>

<pallas_src>
import functools

import jax
import jax.numpy as jnp
from jax.experimental import pallas as pl
from jax.experimental.pallas import tpu as pltpu

LANES = 128
SUBLANES = 8
MAX_TILE_ROWS = 4096     # rows of 128 lanes per grid step (2 MiB f32 per input per buffer)
SUB_CHUNK_ROWS = 512     # inner compute chunk (bounds live f32 temporaries to ~256 KiB each)


def _round_up(a, b):
    return -(-a // b) * b


def _focal_kernel(x_ref, t_ref, o_ref, *, gamma, total_rows, sub_rows, n_sub,
                  binary_targets):
    tile_rows = sub_rows * n_sub
    base_row = pl.program_id(0) * tile_rows
    # Hoisted global row-index iota (JAX does not CSE broadcasts inside loops).
    row_iota = jax.lax.broadcasted_iota(jnp.int32, (sub_rows, LANES), 0) + base_row

    def chunk_loss(r0):
        # Mask rows beyond the valid extent (ragged last block: OOB VMEM is garbage,
        # possibly NaN/Inf, so sanitize BEFORE the logs; (x=1,t=1) contributes exactly 0).
        valid = (row_iota + r0) < total_rows
        x = jnp.where(valid, x_ref[pl.ds(r0, sub_rows), :].astype(jnp.float32), 1.0)
        t = jnp.where(valid, t_ref[pl.ds(r0, sub_rows), :].astype(jnp.float32), 1.0)

        if binary_targets:
            # Fast path (valid only for t in {0,1}): single log per element.
            p_t = jnp.where(t > 0.5, x, 1.0 - x)
            bce = -jnp.maximum(jnp.log(p_t), -100.0)
            one_minus_pt = 1.0 - p_t
        else:
            # Exact PyTorch-equivalent path (soft targets supported).
            log_p = jnp.maximum(jnp.log(x), -100.0)
            log_1mp = jnp.maximum(jnp.log(1.0 - x), -100.0)
            bce = -(log_1mp + t * (log_p - log_1mp))
            pt = jnp.exp(-bce)
            one_minus_pt = 1.0 - pt

        g = float(gamma)
        if g == int(g):
            gi = int(g)
            if gi == 0:
                mod = None                      # (1-pt)**0 == 1
            else:
                mod = one_minus_pt
                for _ in range(gi - 1):         # gamma=2 -> one extra VPU multiply
                    mod = mod * one_minus_pt
        else:
            mod = jnp.power(one_minus_pt, g)

        f_loss = bce if mod is None else mod * bce   # alpha applied in the wrapper

        # Vreg-wise partial reduction: (sub_rows,128) -> (8,128), pure VPU adds.
        return f_loss.reshape(sub_rows // SUBLANES, SUBLANES, LANES).sum(axis=0)

    if n_sub == 1:
        o_ref[0, :, :] = chunk_loss(0)
    else:
        def body(s, acc):
            r0 = pl.multiple_of(s * sub_rows, sub_rows)
            return acc + chunk_loss(r0)

        acc = jax.lax.fori_loop(0, n_sub, body,
                                jnp.zeros((SUBLANES, LANES), jnp.float32),
                                unroll=True)
        o_ref[0, :, :] = acc


def focal_loss(inputs, targets, alpha=0.25, gamma=2, assume_binary_targets=False):
    """inputs/targets: arbitrary (matching) shapes; inputs are probabilities in [0,1]."""
    assert inputs.shape == targets.shape
    n_valid = inputs.size

    x = inputs.reshape(-1)   # free (bitcast) for contiguous row-major inputs
    t = targets.reshape(-1)

    # Stream native narrow dtypes (bf16/int8/int32) straight to the kernel; only
    # convert dtypes Pallas tiles can't carry directly.
    if x.dtype == jnp.bool_:
        x = x.astype(jnp.int8)
    if t.dtype == jnp.bool_:
        t = t.astype(jnp.int8)

    # Lane alignment: zero-copy when numel % 128 == 0 (common case). Otherwise one
    # small (x=1, t=1) pad -> exactly-zero loss contribution.
    rem = (-n_valid) % LANES
    if rem:
        # TODO(synk): this concatenate copies x/t once; only hit when numel % 128 != 0.
        x = jnp.concatenate([x, jnp.ones((rem,), x.dtype)])
        t = jnp.concatenate([t, jnp.ones((rem,), t.dtype)])

    rows = x.size // LANES
    x2 = x.reshape(rows, LANES)
    t2 = t.reshape(rows, LANES)

    # Sublane granularity required by the narrowest streamed dtype (f32->8, bf16->16, i8->32).
    row_mult = SUBLANES
    for dt in (x2.dtype, t2.dtype):
        row_mult = max(row_mult, 32 // max(1, jnp.dtype(dt).itemsize))

    if rows <= SUB_CHUNK_ROWS:
        tile_rows = _round_up(rows, row_mult)              # single (possibly ragged) block
        sub_rows = tile_rows
    else:
        tile_rows = min(MAX_TILE_ROWS, _round_up(rows, SUB_CHUNK_ROWS))
        sub_rows = SUB_CHUNK_ROWS
    n_sub = tile_rows // sub_rows
    num_tiles = -(-rows // tile_rows)

    kernel = functools.partial(
        _focal_kernel,
        gamma=float(gamma),
        total_rows=rows,
        sub_rows=sub_rows,
        n_sub=n_sub,
        binary_targets=bool(assume_binary_targets),
    )

    tile_spec = pl.BlockSpec((tile_rows, LANES), lambda i: (i, 0))
    n_elems = rows * LANES
    cost = pl.CostEstimate(
        flops=10 * n_elems,
        transcendentals=(1 if assume_binary_targets else 3) * n_elems,
        bytes_accessed=(n_elems * jnp.dtype(x2.dtype).itemsize
                        + n_elems * jnp.dtype(t2.dtype).itemsize
                        + num_tiles * SUBLANES * LANES * 4),
    )

    partials = pl.pallas_call(
        kernel,
        out_shape=jax.ShapeDtypeStruct((num_tiles, SUBLANES, LANES), jnp.float32),
        grid_spec=pltpu.PrefetchScalarGridSpec(
            num_scalar_prefetch=0,
            grid=(num_tiles,),
            in_specs=[tile_spec, tile_spec],
            out_specs=pl.BlockSpec((1, SUBLANES, LANES), lambda i: (i, 0, 0)),
        ),
        compiler_params=pltpu.CompilerParams(
            dimension_semantics=("parallel",),     # independent partials; megacore on v7x
            vmem_limit_bytes=32 * 1024 * 1024,
        ),
        cost_estimate=cost,
    )(x2, t2)

    # alpha hoisted out of the per-element path; mean over the ORIGINAL element count.
    return jnp.sum(partials) * jnp.float32(float(alpha) / n_valid)


def focal_loss_ref(inputs, targets, alpha=0.25, gamma=2):
    x = inputs.astype(jnp.float32)
    t = targets.astype(jnp.float32)
    bce = -(t * jnp.maximum(jnp.log(x), -100.0)
            + (1.0 - t) * jnp.maximum(jnp.log(1.0 - x), -100.0))
    pt = jnp.exp(-bce)
    return jnp.mean(alpha * (1.0 - pt) ** gamma * bce)


if __name__ == "__main__":
    key = jax.random.PRNGKey(0)
    k1, k2 = jax.random.split(key)
    # NCHW inputs: probabilities in (0,1), binary targets
    shape = (2, 4, 16, 16)
    inputs = jax.random.uniform(k1, shape, jnp.float32, minval=1e-4, maxval=1.0 - 1e-4)
    targets = (jax.random.uniform(k2, shape, jnp.float32) > 0.5).astype(jnp.float32)

    ref = focal_loss_ref(inputs, targets, alpha=0.25, gamma=2)

    out = focal_loss(inputs, targets, alpha=0.25, gamma=2)
    out = jax.block_until_ready(out)
    assert jnp.allclose(out, ref, rtol=1e-5, atol=1e-6), (out, ref)

    # Binary-target fast path (1 log vs 2 logs + 1 exp); valid here since targets are {0,1}.
    out_fast = jax.block_until_ready(
        focal_loss(inputs, targets, alpha=0.25, gamma=2, assume_binary_targets=True))
    assert jnp.allclose(out_fast, ref, rtol=1e-5, atol=1e-6), (out_fast, ref)

    print("KERNEL_OK")
</pallas_src>

<mosaic_0001>
module attributes {stable_mosaic.version = 11 : i64} {
  func.func @_focal_kernel(%arg0: i32, %arg1: memref<16x128xf32, #tpu.memory_space<vmem>>, %arg2: memref<16x128xf32, #tpu.memory_space<vmem>>, %arg3: memref<1x8x128xf32, #tpu.memory_space<vmem>>) attributes {dimension_semantics = [#tpu.dimension_semantics<parallel>], iteration_bounds = array<i64: 1>, scalar_prefetch = 0 : i64, scratch_operands = 0 : i64, tpu.core_type = #tpu.core_type<tc>, window_params = [{transform_indices = @transform_0, window_bounds = array<i64: 16, 128>}, {transform_indices = @transform_1, window_bounds = array<i64: 16, 128>}, {transform_indices = @transform_2, window_bounds = array<i64: 1, 8, 128>}]} {
    %c16_i32 = arith.constant 16 : i32
    %0 = arith.muli %arg0, %c16_i32 : i32
    %1 = tpu.iota {dimensions = array<i32: 0>} : vector<16x128xi32>
    %2 = vector.broadcast %0 : i32 to vector<16x128xi32>
    %3 = arith.addi %1, %2 : vector<16x128xi32>
    %c0_i32 = arith.constant 0 : i32
    %4 = vector.broadcast %c0_i32 : i32 to vector<16x128xi32>
    %5 = arith.addi %3, %4 : vector<16x128xi32>
    %c16_i32_0 = arith.constant 16 : i32
    %6 = vector.broadcast %c16_i32_0 : i32 to vector<16x128xi32>
    %7 = arith.cmpi slt, %5, %6 : vector<16x128xi32>
    %c0 = arith.constant 0 : index
    %c0_1 = arith.constant 0 : index
    %8 = vector.load %arg1[%c0, %c0_1] : memref<16x128xf32, #tpu.memory_space<vmem>>, vector<16x128xf32>
    %cst = arith.constant 1.000000e+00 : f32
    %9 = vector.broadcast %cst : f32 to vector<16x128xf32>
    %10 = arith.select %7, %8, %9 : vector<16x128xi1>, vector<16x128xf32>
    %c0_2 = arith.constant 0 : index
    %c0_3 = arith.constant 0 : index
    %11 = vector.load %arg2[%c0_2, %c0_3] : memref<16x128xf32, #tpu.memory_space<vmem>>, vector<16x128xf32>
    %cst_4 = arith.constant 1.000000e+00 : f32
    %12 = vector.broadcast %cst_4 : f32 to vector<16x128xf32>
    %13 = arith.select %7, %11, %12 : vector<16x128xi1>, vector<16x128xf32>
    %14 = math.log %10 : vector<16x128xf32>
    %cst_5 = arith.constant -1.000000e+02 : f32
    %15 = vector.broadcast %cst_5 : f32 to vector<16x128xf32>
    %16 = arith.maximumf %14, %15 : vector<16x128xf32>
    %cst_6 = arith.constant 1.000000e+00 : f32
    %17 = vector.broadcast %cst_6 : f32 to vector<16x128xf32>
    %18 = arith.subf %17, %10 : vector<16x128xf32>
    %19 = math.log %18 : vector<16x128xf32>
    %cst_7 = arith.constant -1.000000e+02 : f32
    %20 = vector.broadcast %cst_7 : f32 to vector<16x128xf32>
    %21 = arith.maximumf %19, %20 : vector<16x128xf32>
    %22 = arith.subf %16, %21 : vector<16x128xf32>
    %23 = arith.mulf %13, %22 : vector<16x128xf32>
    %24 = arith.addf %21, %23 : vector<16x128xf32>
    %cst_8 = arith.constant 0.000000e+00 : f32
    %25 = vector.broadcast %cst_8 : f32 to vector<16x128xf32>
    %26 = arith.subf %25, %24 : vector<16x128xf32>
    %cst_9 = arith.constant 0.000000e+00 : f32
    %27 = vector.broadcast %cst_9 : f32 to vector<16x128xf32>
    %28 = arith.subf %27, %26 : vector<16x128xf32>
    %29 = math.exp %28 : vector<16x128xf32>
    %cst_10 = arith.constant 1.000000e+00 : f32
    %30 = vector.broadcast %cst_10 : f32 to vector<16x128xf32>
    %31 = arith.subf %30, %29 : vector<16x128xf32>
    %32 = arith.mulf %31, %31 : vector<16x128xf32>
    %33 = arith.mulf %32, %26 : vector<16x128xf32>
    %34 = vector.shape_cast %33 : vector<16x128xf32> to vector<2x8x128xf32>
    %cst_11 = arith.constant dense<0.000000e+00> : vector<8x128xf32>
    %35 = vector.multi_reduction <add>, %34, %cst_11 [0] : vector<2x8x128xf32> to vector<8x128xf32>
    %c0_12 = arith.constant 0 : index
    %c0_13 = arith.constant 0 : index
    %c0_14 = arith.constant 0 : index
    %36 = vector.load %arg3[%c0_12, %c0_13, %c0_14] : memref<1x8x128xf32, #tpu.memory_space<vmem>>, vector<1x8x128xf32>
    %37 = vector.shape_cast %36 : vector<1x8x128xf32> to vector<8x128xf32>
    %38 = vector.shape_cast %35 : vector<8x128xf32> to vector<1x8x128xf32>
    tpu.vector_store %arg3[%c0_12, %c0_13, %c0_14], %38 {strides = array<i32>} : memref<1x8x128xf32, #tpu.memory_space<vmem>>, vector<1x8x128xf32>,
    return
  }
  func.func @transform_0(%arg0: i32) -> (i32, i32) {
    %c0_i32 = arith.constant 0 : i32
    %c0_i32_0 = arith.constant 0 : i32
    return %arg0, %c0_i32 : i32, i32
  }
  func.func @transform_1(%arg0: i32) -> (i32, i32) {
    %c0_i32 = arith.constant 0 : i32
    %c0_i32_0 = arith.constant 0 : i32
    return %arg0, %c0_i32 : i32, i32
  }
  func.func @transform_2(%arg0: i32) -> (i32, i32, i32) {
    %c0_i32 = arith.constant 0 : i32
    %c0_i32_0 = arith.constant 0 : i32
    %c0_i32_1 = arith.constant 0 : i32
    return %arg0, %c0_i32, %c0_i32_0 : i32, i32, i32
  }
}

</mosaic_0001>

<bundles_post_ra>
// kernel: tpu_custom_call.1
= control target key start
LH: loop header
LB: loop body
LE: loop exit
PB: predicated region body
PF: predicated region fallthrough
CT: control target
= control target key end

     0   :  { %7 = vsyncpa [#allocation3], 0  ;;  %s221_s0 = inlined_call_operand.hbm [shape: f32[16,128], index: 0, kind: input, shape index: {}]   ;;  %s222_s1 = inlined_call_operand.hbm [shape: f32[16,128], index: 1, kind: input, shape index: {}]   ;;  %s223_s2 = inlined_call_operand.hbm [shape: f32[1,8,128], index: 2, kind: output, shape index: {}]  }
   0x1   :  { %8 = vsyncpa [#allocation6], 0 }
   0x2   :  { %9 = vsyncpa [#allocation4], 0  ;;  %s192_s9 = smov [#allocation2]  }
   0x3   :  { %s15_s10 = sshll.u32 %s192_s9, 4  ;;  %s16_s10 = int_to_ptr.vmem [resolvable:$true] %s15_s10 }
   0x4   :  { %s134_s11 = scalar_lea.vmem %s16_s10, 256  ;;  %p139_p1 = scmp.lt.s32.totalorder %s16_s10, %s16_s10 }
   0x5   :  { %p135_p0 = scmp.ne.s32.totalorder %s16_s10, %s134_s11  ;;  %p140_p2 = scmp.lt.s32.totalorder %s134_s11, %s134_s11 }
   0x7   :  { %p141_p3 = por %p140_p2, %p139_p1 }
   0x9   :  { %p142_p4 = pnand %p141_p3, %p135_p0 }
   0xb   :  { %145 = shalt.err (!%p142_p4)
}
   0xc   :  { %s193_s12 = smov 128   ;;  %s194_s13 = smov 8  }
   0xd   :  { %21 = dma.hbm_to_vmem [thread:$0]  %s221_s0, 256, %s16_s10, [#allocation3], %s193_s12, %s193_s12, %s194_s13  }
   0xe   :  { %s195_s16 = smov [#allocation5]  }
   0xf   :  { %s27_s17 = sshll.u32 %s195_s16, 4  ;;  %s28_s17 = int_to_ptr.vmem [resolvable:$true] %s27_s17 }
  0x10   :  { %s154_s18 = scalar_lea.vmem %s28_s17, 256  ;;  %p159_p6 = scmp.lt.s32.totalorder %s28_s17, %s28_s17 }
  0x11   :  { %p155_p5 = scmp.ne.s32.totalorder %s28_s17, %s154_s18  ;;  %p160_p7 = scmp.lt.s32.totalorder %s154_s18, %s154_s18 }
  0x13   :  { %p161_p8 = por %p160_p7, %p159_p6 }
  0x15   :  { %p162_p9 = pnand %p161_p8, %p155_p5 }
  0x17   :  { %165 = shalt.err (!%p162_p9)
}
  0x18   :  { %33 = dma.hbm_to_vmem [thread:$0]  %s222_s1, 256, %s28_s17, [#allocation6], %s193_s12, %s193_s12, %s194_s13  }
  0x19   :  { %186 = dma.done.wait [#allocation3], 256  }
  0x1a   :  { %187 = vsyncadd [#allocation3], 4294967040 }
  0x1b   :  { %188 = dma.done.wait [#allocation6], 256  }
  0x1c   :  { %189 = vsyncadd [#allocation6], 4294967040  ;;  %v49_v0 = vld [vmem:[#allocation2] sm:$0xff]  ;;  %v50_v1 = vld [vmem:[#allocation2 + $0x8] sm:$0xff]  ;;  %s196_s0 = smov [#allocation7]  }
  0x1d   :  { %114 = vlog2.f32 %v49_v0  ;;  %v63_v2 = vsub.f32 1.0, %v49_v0  ;;  %v64_v3 = vsub.f32 1.0, %v50_v1  ;;  %v53_v15 = vld [vmem:[#allocation5] sm:$0xff]  ;;  %v54_v17 = vld [vmem:[#allocation5 + $0x8] sm:$0xff]  ;;  %s99_s1 = sshll.u32 %s196_s0, 4  ;;  %s100_s1 = int_to_ptr.vmem [resolvable:$true] %s99_s1 }
  0x1e   :  { %116 = vlog2.f32 %v50_v1  ;;  %s166_s21 = scalar_lea.vmem %s100_s1, 128  ;;  %p171_p11 = scmp.lt.s32.totalorder %s100_s1, %s100_s1 }
  0x1f   :  { %118 = vlog2.f32 %v63_v2  ;;  %p167_p10 = scmp.ne.s32.totalorder %s100_s1, %s166_s21  ;;  %p172_p12 = scmp.lt.s32.totalorder %s166_s21, %s166_s21 }
  0x20   :  { %120 = vlog2.f32 %v64_v3 }
  0x21   :  { %p173_p13 = por %p172_p12, %p171_p11 }
  0x23   :  { %p174_p0 = pnand %p173_p13, %p167_p10 }
  0x2a   :  { %v115_v4 = vpop.eup %114 }
  0x2b   :  { %v117_v5 = vpop.eup %116  ;;  %v58_v6 = vmul.f32 0.6931472, %v115_v4 }
  0x2c   :  { %v119_v7 = vpop.eup %118  ;;  %v60_v8 = vmul.f32 0.6931472, %v117_v5 }
  0x2d   :  { %v121_v9 = vpop.eup %120  ;;  %v61_v10 = vmax.f32 %v58_v6, -100.0  ;;  %v66_v11 = vmul.f32 0.6931472, %v119_v7 }
  0x2e   :  { %v62_v12 = vmax.f32 %v60_v8, -100.0  ;;  %v68_v13 = vmul.f32 0.6931472, %v121_v9 }
  0x2f   :  { %v69_v14 = vmax.f32 %v66_v11, -100.0 }
  0x30   :  { %v70_v16 = vmax.f32 %v68_v13, -100.0 }
  0x31   :  { %v71_v18 = vsub.f32 %v61_v10, %v69_v14 }
  0x32   :  { %v72_v19 = vsub.f32 %v62_v12, %v70_v16 }
  0x33   :  { %v73_v20 = vmul.f32 %v71_v18, %v53_v15 }
  0x34   :  { %v74_v21 = vmul.f32 %v72_v19, %v54_v17 }
  0x35   :  { %v75_v22 = vadd.f32 %v73_v20, %v69_v14 }
  0x36   :  { %v76_v23 = vadd.f32 %v74_v21, %v70_v16 }
  0x37   :  { %v77_v24 = vsub.f32 0.0, %v75_v22 }
  0x38   :  { %v78_v25 = vsub.f32 0.0, %v76_v23 }
  0x39   :  { %v79_v26 = vsub.f32 0.0, %v77_v24 }
  0x3a   :  { %v80_v27 = vsub.f32 0.0, %v78_v25 }
  0x3b   :  { %v81_v28 = vmul.f32 1.442695, %v79_v26 }
  0x3c   :  { %v83_v29 = vmul.f32 1.442695, %v80_v27 }
  0x3d   :  { %122 = vpow2.f32 %v81_v28 }
  0x3e   :  { %124 = vpow2.f32 %v83_v29 }
  0x4a   :  { %v123_v30 = vpop.eup %122 }
  0x4b   :  { %v125_v31 = vpop.eup %124  ;;  %v85_v32 = vsub.f32 1.0, %v123_v30 }
  0x4c   :  { %v86_v33 = vsub.f32 1.0, %v125_v31 }
  0x4d   :  { %v87_v34 = vmul.f32 %v85_v32, %v85_v32 }
  0x4e   :  { %v88_v35 = vmul.f32 %v86_v33, %v86_v33 }
  0x4f   :  { %v89_v36 = vmul.f32 %v87_v34, %v77_v24 }
  0x50   :  { %v90_v37 = vmul.f32 %v88_v35, %v78_v25 }
  0x52   :  { %v91_v38 = vadd.f32 %v90_v37, %v89_v36 }
  0x54   :  { %92 = vst [vmem:[#allocation7] sm:$0xff] %v91_v38 }
  0x55   :  { %177 = shalt.err (!%p174_p0)
}
  0x56   :  { %102 = dma.vmem_to_hbm [thread:$0]  %s100_s1, 128, %s223_s2, [#allocation4]  }
  0x57   :  { %190 = dma.done.wait [#allocation4], 128  }
  0x58   :  { %191 = vsyncadd [#allocation4], 4294967168 }
  0x59   :  { %106 = vsyncpa [#allocation3], 1 }
  0x5a   :  { %107 = vsyncpa [#allocation6], 1 }
  0x5b   :  { %108 = vsyncpa [#allocation4], 1 }

</bundles_post_ra>
